<compile_context>
chip_gen: v7x
topology: tpu7x:2x2x1
jax: 0.10.0
libtpu: 0.0.40
codegen_flags: <defaults>
</compile_context>

<pallas_src>
import jax
import jax.numpy as jnp
from jax.experimental import pallas as pl
from jax.experimental.pallas import tpu as pltpu


def residual_block_kernel(x_ref, w1_ref, b1_ref, w2_ref, b2_ref, o_ref):
    # Tail rows of the last (partial) block may be garbage; safe because each
    # row is computed independently and OOB rows are masked on write-back.
    x = x_ref[...]                                        # (tm, F) f32
    x_bf = x.astype(jnp.bfloat16)
    # Linear 1 (bf16 operands, f32 accumulate) + bias + ReLU in f32.
    h = jnp.dot(x_bf, w1_ref[...], preferred_element_type=jnp.float32)
    h = jnp.maximum(h + b1_ref[...], 0.0)                 # activation = relu
    # (dropout p=0.0 -> identity)
    # Linear 2 (bf16 operands, f32 accumulate) + bias in f32.
    y = jnp.dot(h.astype(jnp.bfloat16), w2_ref[...],
                preferred_element_type=jnp.float32)
    y = y + b2_ref[...]
    # Residual add with the exact f32 input.
    o_ref[...] = (x + y).astype(o_ref.dtype)


def _round_up(x, m):
    return (x + m - 1) // m * m


def _select_tile_m(n_rows, features, tile_m, vmem_budget_bytes):
    """Pick a sublane-aligned row tile that fits the VMEM budget."""
    # Per tile row: double-buffered x + out (f32) plus ~3 f32 tiles of in-kernel
    # intermediates (x_bf, h, h_bf, y rounded up).
    bytes_per_row = features * 4 * (2 * 2 + 3)
    tm_cap = max(8, (vmem_budget_bytes // bytes_per_row) // 8 * 8)
    tm = max(8, min(tile_m, tm_cap, _round_up(n_rows, 8)))
    tm = _round_up(tm, 8)
    # Only split a 1-step grid in two (for v7x's dual TensorCores) when each
    # core gets a sizeable chunk; otherwise it is pure per-step overhead on
    # the single-TC v5e/v6e and on tiny batches.
    min_rows_per_core = 512
    if -(-n_rows // tm) < 2 and n_rows >= 2 * min_rows_per_core:
        tm = _round_up(-(-n_rows // 2), 8)
    return tm


def prepare_residual_block_params(w1, b1, w2, b2):
    """One-time prep: PyTorch (out,in) weights -> (in,out) bf16; biases -> (1,F) f32."""
    return (jnp.asarray(w1).T.astype(jnp.bfloat16),
            jnp.asarray(b1).reshape(1, -1).astype(jnp.float32),
            jnp.asarray(w2).T.astype(jnp.bfloat16),
            jnp.asarray(b2).reshape(1, -1).astype(jnp.float32))


def residual_block(x, w1_t_bf, b1_2d, w2_t_bf, b2_2d, *,
                   tile_m=2048, vmem_budget_bytes=24 * 1024 * 1024):
    """x: (..., F). Weights/biases as produced by prepare_residual_block_params."""
    orig_shape = x.shape
    F = orig_shape[-1]
    x2 = x.reshape(-1, F)
    N = x2.shape[0]

    tm = _select_tile_m(N, F, tile_m, vmem_budget_bytes)
    grid = (pl.cdiv(N, tm),)

    # VMEM limit from the actual footprint (+50% slack), not a hard-coded 32 MiB.
    io_bytes = 2 * 2 * tm * F * 4                 # x + out, double-buffered, f32
    w_bytes = 2 * 2 * (F * F * 2 + F * 4)         # bf16 weights + f32 biases, dbl-buf
    scratch_bytes = 3 * tm * F * 4                # in-kernel intermediates headroom
    vmem_limit = (io_bytes + w_bytes + scratch_bytes) * 3 // 2 + (1 << 20)
    vmem_limit = int(min(max(vmem_limit, 8 << 20), 48 << 20))

    out = pl.pallas_call(
        residual_block_kernel,
        out_shape=jax.ShapeDtypeStruct((N, F), x.dtype),
        grid_spec=pltpu.PrefetchScalarGridSpec(
            num_scalar_prefetch=0,
            grid=grid,
            in_specs=[
                pl.BlockSpec((tm, F), lambda i: (i, 0)),   # x tile (streamed)
                pl.BlockSpec((F, F), lambda i: (0, 0)),    # W1^T (resident, bf16)
                pl.BlockSpec((1, F), lambda i: (0, 0)),    # b1 (f32)
                pl.BlockSpec((F, F), lambda i: (0, 0)),    # W2^T (resident, bf16)
                pl.BlockSpec((1, F), lambda i: (0, 0)),    # b2 (f32)
            ],
            out_specs=pl.BlockSpec((tm, F), lambda i: (i, 0)),
        ),
        compiler_params=pltpu.CompilerParams(
            dimension_semantics=("parallel",),
            vmem_limit_bytes=vmem_limit,
        ),
    )(x2, w1_t_bf, b1_2d, w2_t_bf, b2_2d)

    return out.reshape(orig_shape)


def residual_block_ref_bf16(x, w1_t, b1, w2_t, b2):
    """Reference mirroring the kernel math (bf16 matmul operands, f32 accum)."""
    h = jnp.dot(x.astype(jnp.bfloat16), w1_t.astype(jnp.bfloat16),
                preferred_element_type=jnp.float32) + b1
    h = jnp.maximum(h, 0.0)
    y = jnp.dot(h.astype(jnp.bfloat16), w2_t.astype(jnp.bfloat16),
                preferred_element_type=jnp.float32) + b2
    return x + y


def residual_block_ref_f32(x, w1_t, b1, w2_t, b2):
    h = jnp.maximum(x @ w1_t + b1, 0.0)
    return x + (h @ w2_t + b2)


if __name__ == "__main__":
    # Small shapes: batch=20 (not a multiple of 8 -> exercises the partial last
    # block / masked OOB writes), features=128 (lane-aligned).
    N, F = 20, 128
    key = jax.random.PRNGKey(0)
    kx, kw1, kb1, kw2, kb2 = jax.random.split(key, 5)

    x = jax.random.normal(kx, (N, F), dtype=jnp.float32)
    # Deterministic "Linear(features, features)" params, PyTorch-style (out, in).
    bound = 1.0 / (F ** 0.5)
    w1 = jax.random.uniform(kw1, (F, F), jnp.float32, -bound, bound)
    b1 = jax.random.uniform(kb1, (F,), jnp.float32, -bound, bound)
    w2 = jax.random.uniform(kw2, (F, F), jnp.float32, -bound, bound)
    b2 = jax.random.uniform(kb2, (F,), jnp.float32, -bound, bound)

    # One-time weight prep (transpose + bf16 cast outside the per-call path).
    params = prepare_residual_block_params(w1, b1, w2, b2)
    run = jax.jit(residual_block)

    out = jax.block_until_ready(run(x, *params))
    assert out.shape == (N, F)

    w1_t, w2_t = w1.T, w2.T
    # Exact-math check against a reference with identical bf16/f32 mixing.
    ref_bf = residual_block_ref_bf16(x, w1_t, b1, w2_t, b2)
    assert jnp.allclose(out, ref_bf, atol=2e-3, rtol=2e-3), "mismatch vs bf16 reference"
    # Semantics sanity check against the full-f32 PyTorch-equivalent forward.
    ref_f32 = residual_block_ref_f32(x, w1_t, b1, w2_t, b2)
    assert jnp.allclose(out, ref_f32, atol=5e-2, rtol=5e-2), "mismatch vs f32 reference"

    # Also exercise the ND-leading-dims path (module works on any (..., F) input).
    x3 = jax.random.normal(kx, (2, 10, F), dtype=jnp.float32)
    out3 = jax.block_until_ready(run(x3, *params))
    ref3 = residual_block_ref_f32(x3.reshape(-1, F), w1_t, b1, w2_t, b2).reshape(x3.shape)
    assert jnp.allclose(out3, ref3, atol=5e-2, rtol=5e-2), "mismatch on 3D input"

    print("KERNEL_OK")
</pallas_src>

<mosaic_0001>
module attributes {stable_mosaic.version = 11 : i64} {
  func.func @residual_block_kernel(%arg0: i32, %arg1: memref<24x128xf32, #tpu.memory_space<vmem>>, %arg2: memref<128x128xbf16, #tpu.memory_space<vmem>>, %arg3: memref<1x128xf32, #tpu.memory_space<vmem>>, %arg4: memref<128x128xbf16, #tpu.memory_space<vmem>>, %arg5: memref<1x128xf32, #tpu.memory_space<vmem>>, %arg6: memref<24x128xf32, #tpu.memory_space<vmem>>) attributes {dimension_semantics = [#tpu.dimension_semantics<parallel>], iteration_bounds = array<i64: 1>, scalar_prefetch = 0 : i64, scratch_operands = 0 : i64, tpu.core_type = #tpu.core_type<tc>, window_params = [{transform_indices = @transform_0, window_bounds = array<i64: 24, 128>}, {pipeline_mode = #tpu.pipeline_mode<synchronous>, transform_indices = @transform_1, window_bounds = array<i64: 128, 128>}, {pipeline_mode = #tpu.pipeline_mode<synchronous>, transform_indices = @transform_2, window_bounds = array<i64: 1, 128>}, {pipeline_mode = #tpu.pipeline_mode<synchronous>, transform_indices = @transform_3, window_bounds = array<i64: 128, 128>}, {pipeline_mode = #tpu.pipeline_mode<synchronous>, transform_indices = @transform_4, window_bounds = array<i64: 1, 128>}, {transform_indices = @transform_5, window_bounds = array<i64: 24, 128>}]} {
    %c0 = arith.constant 0 : index
    %c0_0 = arith.constant 0 : index
    %0 = vector.load %arg1[%c0, %c0_0] : memref<24x128xf32, #tpu.memory_space<vmem>>, vector<24x128xf32>
    %1 = arith.truncf %0 : vector<24x128xf32> to vector<24x128xbf16>
    %c0_1 = arith.constant 0 : index
    %c0_2 = arith.constant 0 : index
    %2 = vector.load %arg2[%c0_1, %c0_2] : memref<128x128xbf16, #tpu.memory_space<vmem>>, vector<128x128xbf16>
    %cst = arith.constant dense<0.000000e+00> : vector<24x128xf32>
    %3 = tpu.matmul %1, %2, %cst {dimension_numbers = #tpu.dot_dimension_numbers<[1], [0], [0], [1], [0, 0, 1, 1], [], []>} : vector<24x128xbf16>, vector<128x128xbf16>, vector<24x128xf32> -> vector<24x128xf32>
    %c0_3 = arith.constant 0 : index
    %c0_4 = arith.constant 0 : index
    %4 = vector.load %arg3[%c0_3, %c0_4] : memref<1x128xf32, #tpu.memory_space<vmem>>, vector<1x128xf32>
    %5 = vector.broadcast %4 : vector<1x128xf32> to vector<24x128xf32>
    %6 = arith.addf %3, %5 : vector<24x128xf32>
    %cst_5 = arith.constant 0.000000e+00 : f32
    %7 = vector.broadcast %cst_5 : f32 to vector<24x128xf32>
    %8 = arith.maximumf %6, %7 : vector<24x128xf32>
    %9 = arith.truncf %8 : vector<24x128xf32> to vector<24x128xbf16>
    %c0_6 = arith.constant 0 : index
    %c0_7 = arith.constant 0 : index
    %10 = vector.load %arg4[%c0_6, %c0_7] : memref<128x128xbf16, #tpu.memory_space<vmem>>, vector<128x128xbf16>
    %cst_8 = arith.constant dense<0.000000e+00> : vector<24x128xf32>
    %11 = tpu.matmul %9, %10, %cst_8 {dimension_numbers = #tpu.dot_dimension_numbers<[1], [0], [0], [1], [0, 0, 1, 1], [], []>} : vector<24x128xbf16>, vector<128x128xbf16>, vector<24x128xf32> -> vector<24x128xf32>
    %c0_9 = arith.constant 0 : index
    %c0_10 = arith.constant 0 : index
    %12 = vector.load %arg5[%c0_9, %c0_10] : memref<1x128xf32, #tpu.memory_space<vmem>>, vector<1x128xf32>
    %13 = vector.broadcast %12 : vector<1x128xf32> to vector<24x128xf32>
    %14 = arith.addf %11, %13 : vector<24x128xf32>
    %15 = arith.addf %0, %14 : vector<24x128xf32>
    %c0_11 = arith.constant 0 : index
    %c0_12 = arith.constant 0 : index
    %16 = vector.load %arg6[%c0_11, %c0_12] : memref<24x128xf32, #tpu.memory_space<vmem>>, vector<24x128xf32>
    tpu.vector_store %arg6[%c0_11, %c0_12], %15 {strides = array<i32>} : memref<24x128xf32, #tpu.memory_space<vmem>>, vector<24x128xf32>,
    return
  }
  func.func @transform_0(%arg0: i32) -> (i32, i32) {
    %c0_i32 = arith.constant 0 : i32
    %c0_i32_0 = arith.constant 0 : i32
    return %arg0, %c0_i32 : i32, i32
  }
  func.func @transform_1(%arg0: i32) -> (i32, i32) {
    %c0_i32 = arith.constant 0 : i32
    %c0_i32_0 = arith.constant 0 : i32
    %c0_i32_1 = arith.constant 0 : i32
    return %c0_i32, %c0_i32_0 : i32, i32
  }
  func.func @transform_2(%arg0: i32) -> (i32, i32) {
    %c0_i32 = arith.constant 0 : i32
    %c0_i32_0 = arith.constant 0 : i32
    %c0_i32_1 = arith.constant 0 : i32
    return %c0_i32, %c0_i32_0 : i32, i32
  }
  func.func @transform_3(%arg0: i32) -> (i32, i32) {
    %c0_i32 = arith.constant 0 : i32
    %c0_i32_0 = arith.constant 0 : i32
    %c0_i32_1 = arith.constant 0 : i32
    return %c0_i32, %c0_i32_0 : i32, i32
  }
  func.func @transform_4(%arg0: i32) -> (i32, i32) {
    %c0_i32 = arith.constant 0 : i32
    %c0_i32_0 = arith.constant 0 : i32
    %c0_i32_1 = arith.constant 0 : i32
    return %c0_i32, %c0_i32_0 : i32, i32
  }
  func.func @transform_5(%arg0: i32) -> (i32, i32) {
    %c0_i32 = arith.constant 0 : i32
    %c0_i32_0 = arith.constant 0 : i32
    return %arg0, %c0_i32 : i32, i32
  }
}

</mosaic_0001>

<bundles_post_ra>
// kernel: residual_block.1
= control target key start
LH: loop header
LB: loop body
LE: loop exit
PB: predicated region body
PF: predicated region fallthrough
CT: control target
= control target key end

     0   :  { %10 = vsyncpa [#allocation3], 0  ;;  %s643_s0 = inlined_call_operand.hbm [shape: f32[20,128], index: 0, kind: input, shape index: {}]   ;;  %s644_s1 = inlined_call_operand.hbm [shape: bf16[128,128], index: 1, kind: input, shape index: {}]   ;;  %s645_s2 = inlined_call_operand.vmem [shape: f32[1,128], index: 2, kind: input, shape index: {}]   ;;  %s646_s3 = inlined_call_operand.hbm [shape: bf16[128,128], index: 3, kind: input, shape index: {}]   ;;  %s647_s4 = inlined_call_operand.vmem [shape: f32[1,128], index: 4, kind: input, shape index: {}]   ;;  %s648_s5 = inlined_call_operand.hbm [shape: f32[20,128], index: 5, kind: output, shape index: {}]  }
   0x1   :  { %11 = vsyncpa [#allocation6], 0 }
   0x2   :  { %12 = vsyncpa [#allocation4], 0  ;;  %s531_s18 = smov [#allocation5]   ;;  %s437_s22 = scalar_lea.hbm %s644_s1, 1024 }
   0x3   :  { %s30_s19 = sshll.u32 %s531_s18, 4  ;;  %p438_p0 = scmp.ne.s32.totalorder %s644_s1, %s437_s22  ;;  %s31_s19 = int_to_ptr.vmem [resolvable:$true] %s30_s19 }
   0x4   :  { %p441_p1 = scmp.lt.u32.totalorder %s437_s22, %s644_s1 }
   0x6   :  { %p443_p2 = pnand %p441_p1, %p438_p0 }
   0x8   :  { %446 = shalt.err (!%p443_p2)
}
   0x9   :  { %s447_s27 = scalar_lea.vmem %s31_s19, 1024  ;;  %p452_p4 = scmp.lt.s32.totalorder %s31_s19, %s31_s19 }
   0xa   :  { %p448_p3 = scmp.ne.s32.totalorder %s31_s19, %s447_s27  ;;  %p453_p5 = scmp.lt.s32.totalorder %s447_s27, %s447_s27 }
   0xc   :  { %p454_p6 = por %p453_p5, %p452_p4 }
   0xe   :  { %p455_p7 = pnand %p454_p6, %p448_p3 }
  0x10   :  { %458 = shalt.err (!%p455_p7)
}
  0x11   :  { %s532_s28 = smov 64   ;;  %s533_s29 = smov 4  }
  0x12   :  { %36 = dma.hbm_to_vmem [thread:$0]  %s644_s1, 1024, %s31_s19, [#allocation6], %s532_s28, %s532_s28, %s533_s29  }
  0x13   :  { %s534_s7 = smov [#allocation2]   ;;  %s459_s11 = scalar_lea.hbm %s643_s0, 384 }
  0x14   :  { %s18_s8 = sshll.u32 %s534_s7, 4  ;;  %p460_p8 = scmp.ne.s32.totalorder %s643_s0, %s459_s11  ;;  %s19_s8 = int_to_ptr.vmem [resolvable:$true] %s18_s8 }
  0x15   :  { %p463_p9 = scmp.lt.u32.totalorder %s459_s11, %s643_s0 }
  0x17   :  { %p465_p10 = pnand %p463_p9, %p460_p8 }
  0x19   :  { %468 = shalt.err (!%p465_p10)
}
  0x1a   :  { %s469_s16 = scalar_lea.vmem %s19_s8, 384  ;;  %p474_p12 = scmp.lt.s32.totalorder %s19_s8, %s19_s8 }
  0x1b   :  { %p470_p11 = scmp.ne.s32.totalorder %s19_s8, %s469_s16  ;;  %p475_p13 = scmp.lt.s32.totalorder %s469_s16, %s469_s16 }
  0x1d   :  { %p476_p0 = por %p475_p13, %p474_p12 }
  0x1f   :  { %p477_p1 = pnand %p476_p0, %p470_p11 }
  0x21   :  { %480 = shalt.err (!%p477_p1)
}
  0x22   :  { %s535_s1 = smov 128   ;;  %s536_s17 = smov 8  }
  0x23   :  { %24 = dma.hbm_to_vmem [thread:$0]  %s643_s0, 384, %s19_s8, [#allocation3], %s535_s1, %s535_s1, %s536_s17  }
  0x24   :  { %s537_s20 = smov [#allocation7]   ;;  %s481_s24 = scalar_lea.hbm %s646_s3, 1024 }
  0x25   :  { %s44_s21 = sshll.u32 %s537_s20, 4  ;;  %p482_p2 = scmp.ne.s32.totalorder %s646_s3, %s481_s24  ;;  %s45_s21 = int_to_ptr.vmem [resolvable:$true] %s44_s21 }
  0x26   :  { %p485_p3 = scmp.lt.u32.totalorder %s481_s24, %s646_s3 }
  0x28   :  { %p487_p4 = pnand %p485_p3, %p482_p2 }
  0x2a   :  { %490 = shalt.err (!%p487_p4)
}
  0x2b   :  { %s491_s6 = scalar_lea.vmem %s45_s21, 1024  ;;  %p496_p6 = scmp.lt.s32.totalorder %s45_s21, %s45_s21 }
  0x2c   :  { %p492_p5 = scmp.ne.s32.totalorder %s45_s21, %s491_s6  ;;  %p497_p7 = scmp.lt.s32.totalorder %s491_s6, %s491_s6 }
  0x2e   :  { %p498_p8 = por %p497_p7, %p496_p6 }
  0x30   :  { %p499_p9 = pnand %p498_p8, %p492_p5 }
  0x32   :  { %502 = shalt.err (!%p499_p9)
}
  0x33   :  { %50 = dma.hbm_to_vmem [thread:$0]  %s646_s3, 1024, %s45_s21, [#allocation6], %s532_s28, %s532_s28, %s533_s29  }
  0x34   :  { %525 = dma.done.wait [#allocation3], 384  }
  0x35   :  { %526 = vsyncadd [#allocation3], 4294966912 }
  0x36   :  { %527 = dma.done.wait [#allocation6], 2048  }
  0x37   :  { %528 = vsyncadd [#allocation6], 4294965248  ;;  %v421_v0 = vld [vmem:[#allocation5] sm:$0xff]   ;;  %v422_v1 = vld [vmem:[#allocation5 + $0x8] sm:$0xff]  }
  0x38   :  { %373 = vmatprep.subr.bf16.mxu0 %v421_v0  ;;  %v423_v2 = vld [vmem:[#allocation5 + $0x10] sm:$0xff]   ;;  %v424_v3 = vld [vmem:[#allocation5 + $0x18] sm:$0xff]   ;;  %v614_v4 = vld [vmem:[#allocation2] sm:$0xff] }
  0x39   :  { %374 = vmatpush3.bf16.msra.mxu0 %v421_v0  ;;  %v616_v5 = vld [vmem:[#allocation2 + $0x8] sm:$0xff]  ;;  %v429_v7 = vld [vmem:[#allocation7] sm:$0xff]   ;;  %v430_v8 = vld [vmem:[#allocation7 + $0x8] sm:$0xff]  }
  0x3a   :  { %375 = vmatprep.subr.bf16.mxu0 %v422_v1  ;;  %v66_v6 = vpack.c.bf16 %v616_v5, %v614_v4  ;;  %v425_v9 = vld [vmem:[#allocation5 + $0x20] sm:$0xff]   ;;  %393 = vmatprep.subr.bf16.mxu1 %v429_v7  ;;  %v431_v10 = vld [vmem:[#allocation7 + $0x10] sm:$0xff]   ;;  %v426_v11 = vld [vmem:[#allocation5 + $0x28] sm:$0xff]  }
  0x3b   :  { %394 = vmatpush3.bf16.msra.mxu1 %v429_v7  ;;  %v432_v12 = vld [vmem:[#allocation7 + $0x18] sm:$0xff]   ;;  %v427_v13 = vld [vmem:[#allocation5 + $0x30] sm:$0xff]   ;;  %v433_v14 = vld [vmem:[#allocation7 + $0x20] sm:$0xff]  }
  0x3c   :  { %389 = vmatprep.mubr.bf16.mxu0 %v66_v6  ;;  %395 = vmatprep.subr.bf16.mxu1 %v430_v8  ;;  %v428_v15 = vld [vmem:[#allocation5 + $0x38] sm:$0xff]   ;;  %v434_v16 = vld [vmem:[#allocation7 + $0x28] sm:$0xff]   ;;  %v435_v19 = vld [vmem:[#allocation7 + $0x30] sm:$0xff]  }
  0x3d   :  { %376 = vmatpush3.bf16.msra.mxu0 %v422_v1  ;;  %v65_v17 = vld [vmem:[#allocation2 + $0x10] sm:$0xff]  ;;  %v335_v21 = vld [vmem:[%s645_s2] ss:$0 sm:$0xff]  ;;  %s538_s2 = smov [#allocation8]  }
  0x3e   :  { %377 = vmatprep.subr.bf16.mxu0 %v423_v2  ;;  %v67_v18 = vpack.c.bf16 %v65_v17, %v65_v17  ;;  %v436_v20 = vld [vmem:[#allocation7 + $0x38] sm:$0xff]   ;;  %v344_v34 = vld [vmem:[%s647_s4] ss:$0 sm:$0xff]  ;;  %s322_s9 = sshll.u32 %s538_s2, 4  ;;  %s323_s9 = int_to_ptr.vmem [resolvable:$true] %s322_s9 }
  0x3f   :  { %396 = vmatpush3.bf16.msra.mxu1 %v430_v8  ;;  %s503_s10 = scalar_lea.vmem %s323_s9, 384  ;;  %p508_p11 = scmp.lt.s32.totalorder %s323_s9, %s323_s9 }
  0x40   :  { %397 = vmatprep.subr.bf16.mxu1 %v431_v10  ;;  %p504_p10 = scmp.ne.s32.totalorder %s323_s9, %s503_s10  ;;  %p509_p12 = scmp.lt.s32.totalorder %s503_s10, %s503_s10 }
  0x41   :  { %378 = vmatpush3.bf16.msra.mxu0 %v423_v2 }
  0x42   :  { %379 = vmatprep.subr.bf16.mxu0 %v424_v3  ;;  %p510_p13 = por %p509_p12, %p508_p11 }
  0x43   :  { %398 = vmatpush3.bf16.msra.mxu1 %v431_v10 }
  0x44   :  { %399 = vmatprep.subr.bf16.mxu1 %v432_v12  ;;  %p511_p0 = pnand %p510_p13, %p504_p10 }
  0x45   :  { %380 = vmatpush3.bf16.msra.mxu0 %v424_v3 }
  0x46   :  { %381 = vmatprep.subr.bf16.mxu0 %v425_v9 }
  0x47   :  { %400 = vmatpush3.bf16.msra.mxu1 %v432_v12 }
  0x48   :  { %401 = vmatprep.subr.bf16.mxu1 %v433_v14 }
  0x49   :  { %382 = vmatpush3.bf16.msra.mxu0 %v425_v9 }
  0x4a   :  { %383 = vmatprep.subr.bf16.mxu0 %v426_v11 }
  0x4b   :  { %402 = vmatpush3.bf16.msra.mxu1 %v433_v14 }
  0x4c   :  { %403 = vmatprep.subr.bf16.mxu1 %v434_v16 }
  0x4d   :  { %384 = vmatpush3.bf16.msra.mxu0 %v426_v11 }
  0x4e   :  { %385 = vmatprep.subr.bf16.mxu0 %v427_v13 }
  0x4f   :  { %404 = vmatpush3.bf16.msra.mxu1 %v434_v16 }
  0x50   :  { %405 = vmatprep.subr.bf16.mxu1 %v435_v19 }
  0x51   :  { %386 = vmatpush3.bf16.msra.mxu0 %v427_v13 }
  0x52   :  { %387 = vmatprep.subr.bf16.mxu0 %v428_v15 }
  0x53   :  { %406 = vmatpush3.bf16.msra.mxu1 %v435_v19 }
  0x54   :  { %407 = vmatprep.subr.bf16.mxu1 %v436_v20 }
  0x55   :  { %388 = vmatpush3.bf16.msra.mxu0 %v428_v15 }
  0x57   :  { %408 = vmatpush3.bf16.msra.mxu1 %v436_v20 }
  0x58   :  { %390 = vmatmul.mubr.bf16.vlgmr.msra.gmra.mrb[0].mxu0 %v67_v18 }
 0x12b   :  { %v391_v22 = vpop.f32.mrb[0].mxu0 }
 0x12c   :  { %v182_v23 = vadd.f32 %v391_v22, %v335_v21  ;;  %v173_v24 = vpop.f32.mrb[1].mxu0 }
 0x12d   :  { %v174_v25 = vadd.f32 %v335_v21, %v173_v24  ;;  %v392_v26 = vpop.f32.mrb[2].mxu0 }
 0x12e   :  { %v176_v27 = vpop.f32.mrb[3].mxu0  ;;  %v189_v29 = vmax.f32 %v182_v23, 0.0 }
 0x12f   :  { %v177_v28 = vadd.f32 %v335_v21, %v176_v27  ;;  %v187_v30 = vmax.f32 %v174_v25, 0.0 }
 0x130   :  { %v191_v33 = vpack.c.bf16 %v189_v29, %v189_v29 }
 0x131   :  { %v188_v31 = vmax.f32 %v177_v28, 0.0 }
 0x133   :  { %v190_v32 = vpack.c.bf16 %v188_v31, %v187_v30 }
 0x135   :  { %409 = vmatprep.mubr.bf16.mxu1 %v190_v32 }
 0x136   :  { %410 = vmatmul.mubr.bf16.vlgmr.msra.gmra.mrb[0].mxu1 %v191_v33 }
 0x209   :  { %v411_v35 = vpop.f32.mrb[0].mxu1 }
 0x20a   :  { %v306_v36 = vadd.f32 %v411_v35, %v344_v34  ;;  %v297_v37 = vpop.f32.mrb[1].mxu1 }
 0x20b   :  { %v298_v38 = vadd.f32 %v344_v34, %v297_v37  ;;  %v412_v39 = vpop.f32.mrb[2].mxu1 }
 0x20c   :  { %v313_v40 = vadd.f32 %v306_v36, %v65_v17  ;;  %v300_v41 = vpop.f32.mrb[3].mxu1 }
 0x20d   :  { %v311_v42 = vadd.f32 %v298_v38, %v614_v4  ;;  %v301_v43 = vadd.f32 %v344_v34, %v300_v41 }
 0x20e   :  { %316 = vst [vmem:[#allocation8 + $0x10] sm:$0xff] %v313_v40 }
 0x20f   :  { %314 = vst [vmem:[#allocation8] sm:$0xff] %v311_v42  ;;  %v312_v44 = vadd.f32 %v301_v43, %v616_v5 }
 0x211   :  { %315 = vst [vmem:[#allocation8 + $0x8] sm:$0xff] %v312_v44 }
 0x212   :  { %514 = shalt.err (!%p511_p0)
}
 0x213   :  { %s515_s12 = scalar_lea.hbm %s648_s5, 384 }
 0x214   :  { %p516_p1 = scmp.ne.s32.totalorder %s648_s5, %s515_s12  ;;  %p519_p2 = scmp.lt.u32.totalorder %s515_s12, %s648_s5 }
 0x216   :  { %p521_p3 = pnand %p519_p2, %p516_p1 }
 0x218   :  { %524 = shalt.err (!%p521_p3)
}
 0x219   :  { %328 = dma.vmem_to_hbm [thread:$0]  %s323_s9, 384, %s648_s5, [#allocation4], %s535_s1, %s535_s1, %s536_s17  }
 0x21a   :  { %529 = dma.done.wait [#allocation4], 384  }
 0x21b   :  { %530 = vsyncadd [#allocation4], 4294966912 }
 0x21c   :  { %332 = vsyncpa [#allocation3], 1 }
 0x21d   :  { %333 = vsyncpa [#allocation6], 1 }
 0x21e   :  { %334 = vsyncpa [#allocation4], 1 }

</bundles_post_ra>
